<compile_context>
chip_gen: v7x
topology: tpu7x:2x2x1
jax: 0.10.0
libtpu: 0.0.40
codegen_flags: <defaults>
</compile_context>

<pallas_src>
import numpy as np
import jax
import jax.numpy as jnp
from jax import lax
from jax.experimental import pallas as pl
from jax.experimental.pallas import tpu as pltpu


# ----------------------------------------------------------------------------- kernel
def _spconv_matmul_kernel(x_ref, w_ref, b_ref, o_ref):
    """One fused conv-as-matmul step.

    x_ref: (1, K, HWt) im2col block   w_ref: (C_total, K)   b_ref: (C_total, 1)
    o_ref: (1, C_total, HWt)  -- lane-dense (HWt is a multiple of 128 or the full axis).
    """
    acc = jnp.dot(w_ref[...], x_ref[0], preferred_element_type=jnp.float32)
    o_ref[0] = (acc + b_ref[...]).astype(o_ref.dtype)


# ---------------------------------------------------------------------------- wrapper
def _pick_hw_tile(hw, k_dim, c_total, vmem_budget_bytes=24 * 1024 * 1024):
    """Largest lane-aligned (multiple of 128) tile dividing hw that fits the VMEM budget.

    Working set per step (f32): 2x double-buffered x block (k_dim * t) +
    2x double-buffered out block (c_total * t) + resident weight (c_total * k_dim).
    Falls back to the full axis (legal BlockSpec) if hw has no 128-aligned divisor.
    """
    resident = 4 * c_total * k_dim
    per_lane = 4 * 2 * (k_dim + c_total)          # bytes per output-lane column
    max_tile = max(128, (vmem_budget_bytes - resident) // max(per_lane, 1))
    if hw <= max_tile:
        return hw
    t = max_tile - (max_tile % 128)
    while t >= 128:
        if hw % t == 0:
            return t
        t -= 128
    return hw


def sp_conv_transpose2d_pallas(x_nchw, w_oihw, b, *, kernel_size, r):
    kh, kw = (kernel_size if isinstance(kernel_size, (tuple, list))
              else (kernel_size, kernel_size))
    bsz, cin, h, wdt = x_nchw.shape
    c_total = w_oihw.shape[0]
    assert c_total % r == 0
    c_out = c_total // r

    # ConstantPad2d((1, 1, 0, 0)): pad the width (last) axis by 1 on each side.
    xp = jnp.pad(x_nchw, ((0, 0), (0, 0), (0, 0), (1, 1)))
    h_out = h - kh + 1
    w_out = (wdt + 2) - kw + 1
    hw = h_out * w_out
    k_dim = kh * kw * cin

    # Wrapper-side im2col: every kernel tap goes into the contraction dim
    # (tap-major, channel-minor ordering).
    cols = [xp[:, :, dh:dh + h_out, dw:dw + w_out]
            for dh in range(kh) for dw in range(kw)]
    xcol = jnp.concatenate(cols, axis=1).reshape(bsz, k_dim, hw).astype(jnp.float32)

    # Conv2d weight (C_total, Cin, kh, kw) -> (C_total, K) matching the im2col ordering.
    w_mat = jnp.transpose(w_oihw, (0, 2, 3, 1)).reshape(c_total, k_dim).astype(jnp.float32)
    b_col = b.reshape(c_total, 1).astype(jnp.float32)

    hw_t = _pick_hw_tile(hw, k_dim, c_total)
    grid = (bsz, hw // hw_t)

    out_flat = pl.pallas_call(
        _spconv_matmul_kernel,
        out_shape=jax.ShapeDtypeStruct((bsz, c_total, hw), jnp.float32),
        grid=grid,
        in_specs=[
            pl.BlockSpec((1, k_dim, hw_t), lambda i, j: (i, 0, j)),
            pl.BlockSpec((c_total, k_dim), lambda i, j: (0, 0)),
            pl.BlockSpec((c_total, 1), lambda i, j: (0, 0)),
        ],
        out_specs=pl.BlockSpec((1, c_total, hw_t), lambda i, j: (i, 0, j)),
        compiler_params=pltpu.CompilerParams(
            dimension_semantics=("parallel", "parallel"),
            vmem_limit_bytes=64 * 1024 * 1024),
        cost_estimate=pl.CostEstimate(
            flops=2 * bsz * c_total * k_dim * hw,
            transcendentals=0,
            bytes_accessed=4 * (bsz * k_dim * hw + c_total * k_dim
                                + bsz * c_total * hw)),
    )(xcol, w_mat, b_col)

    # Sub-pixel width shuffle: exactly the view / permute / view of the PyTorch module.
    out = out_flat.reshape(bsz, r, c_out, h_out, w_out)
    out = jnp.transpose(out, (0, 2, 3, 4, 1))
    return out.reshape(bsz, c_out, h_out, w_out * r)


# ------------------------------------------------------------------- pure-JAX reference
def sp_conv_transpose2d_ref(x_nchw, w_oihw, b, *, kernel_size, r):
    kh, kw = (kernel_size if isinstance(kernel_size, (tuple, list))
              else (kernel_size, kernel_size))
    xp = jnp.pad(x_nchw, ((0, 0), (0, 0), (0, 0), (1, 1)))
    y = lax.conv_general_dilated(xp, w_oihw, window_strides=(1, 1), padding="VALID",
                                 dimension_numbers=("NCHW", "OIHW", "NCHW"))
    y = y + b[None, :, None, None]
    bsz, nch, hh, ww = y.shape
    y = y.reshape(bsz, r, nch // r, hh, ww)
    y = jnp.transpose(y, (0, 2, 3, 4, 1))
    return y.reshape(bsz, nch // r, hh, ww * r)


# --------------------------------------------------------------------------------- main
if __name__ == "__main__":
    B, IN_CH, OUT_CH, T, F, R = 2, 32, 32, 16, 16, 2
    KSIZE = (1, 3)

    key = jax.random.PRNGKey(0)
    kx, kw_, kb = jax.random.split(key, 3)
    x = jax.random.normal(kx, (B, IN_CH, T, F), jnp.float32)            # NCHW like PyTorch
    fan_in = IN_CH * KSIZE[0] * KSIZE[1]
    w = jax.random.normal(kw_, (OUT_CH * R, IN_CH, KSIZE[0], KSIZE[1]),
                          jnp.float32) / np.sqrt(fan_in)                # Conv2d weight layout
    b = 0.05 * jax.random.normal(kb, (OUT_CH * R,), jnp.float32)

    out = jax.block_until_ready(
        sp_conv_transpose2d_pallas(x, w, b, kernel_size=KSIZE, r=R))
    ref = jax.block_until_ready(
        sp_conv_transpose2d_ref(x, w, b, kernel_size=KSIZE, r=R))

    assert out.shape == (B, OUT_CH, T, F * R), out.shape
    np.testing.assert_allclose(np.asarray(out), np.asarray(ref), rtol=2e-2, atol=2e-2)
    print("KERNEL_OK")
</pallas_src>

<mosaic_0001>
module attributes {stable_mosaic.version = 11 : i64} {
  func.func @_spconv_matmul_kernel(%arg0: i32, %arg1: i32, %arg2: memref<1x96x256xf32, #tpu.memory_space<vmem>>, %arg3: memref<64x96xf32, #tpu.memory_space<vmem>>, %arg4: memref<64x1xf32, #tpu.memory_space<vmem>>, %arg5: memref<1x64x256xf32, #tpu.memory_space<vmem>>) attributes {dimension_semantics = [#tpu.dimension_semantics<parallel>, #tpu.dimension_semantics<parallel>], iteration_bounds = array<i64: 2, 1>, scalar_prefetch = 0 : i64, scratch_operands = 0 : i64, tpu.core_type = #tpu.core_type<tc>, window_params = [{transform_indices = @transform_0, window_bounds = array<i64: 1, 96, 256>}, {pipeline_mode = #tpu.pipeline_mode<synchronous>, transform_indices = @transform_1, window_bounds = array<i64: 64, 96>}, {pipeline_mode = #tpu.pipeline_mode<synchronous>, transform_indices = @transform_2, window_bounds = array<i64: 64, 1>}, {transform_indices = @transform_3, window_bounds = array<i64: 1, 64, 256>}]} {
    %c0 = arith.constant 0 : index
    %c0_0 = arith.constant 0 : index
    %0 = vector.load %arg3[%c0, %c0_0] : memref<64x96xf32, #tpu.memory_space<vmem>>, vector<64x96xf32>
    %c0_1 = arith.constant 0 : index
    %c0_2 = arith.constant 0 : index
    %c0_3 = arith.constant 0 : index
    %1 = vector.load %arg2[%c0_1, %c0_2, %c0_3] : memref<1x96x256xf32, #tpu.memory_space<vmem>>, vector<1x96x256xf32>
    %2 = vector.shape_cast %1 : vector<1x96x256xf32> to vector<96x256xf32>
    %cst = arith.constant dense<0.000000e+00> : vector<64x256xf32>
    %3 = tpu.matmul %0, %2, %cst {dimension_numbers = #tpu.dot_dimension_numbers<[1], [0], [0], [1], [0, 0, 1, 1], [], []>} : vector<64x96xf32>, vector<96x256xf32>, vector<64x256xf32> -> vector<64x256xf32>
    %c0_4 = arith.constant 0 : index
    %c0_5 = arith.constant 0 : index
    %4 = vector.load %arg4[%c0_4, %c0_5] : memref<64x1xf32, #tpu.memory_space<vmem>>, vector<64x1xf32>
    %5 = vector.broadcast %4 : vector<64x1xf32> to vector<64x256xf32>
    %6 = arith.addf %3, %5 : vector<64x256xf32>
    %c0_6 = arith.constant 0 : index
    %c0_7 = arith.constant 0 : index
    %c0_8 = arith.constant 0 : index
    %7 = vector.load %arg5[%c0_6, %c0_7, %c0_8] : memref<1x64x256xf32, #tpu.memory_space<vmem>>, vector<1x64x256xf32>
    %8 = vector.shape_cast %7 : vector<1x64x256xf32> to vector<64x256xf32>
    %9 = vector.shape_cast %6 : vector<64x256xf32> to vector<1x64x256xf32>
    tpu.vector_store %arg5[%c0_6, %c0_7, %c0_8], %9 {strides = array<i32>} : memref<1x64x256xf32, #tpu.memory_space<vmem>>, vector<1x64x256xf32>,
    return
  }
  func.func @transform_0(%arg0: i32, %arg1: i32) -> (i32, i32, i32) {
    %c0_i32 = arith.constant 0 : i32
    %c0_i32_0 = arith.constant 0 : i32
    return %arg0, %c0_i32, %arg1 : i32, i32, i32
  }
  func.func @transform_1(%arg0: i32, %arg1: i32) -> (i32, i32) {
    %c0_i32 = arith.constant 0 : i32
    %c0_i32_0 = arith.constant 0 : i32
    %c0_i32_1 = arith.constant 0 : i32
    return %c0_i32, %c0_i32_0 : i32, i32
  }
  func.func @transform_2(%arg0: i32, %arg1: i32) -> (i32, i32) {
    %c0_i32 = arith.constant 0 : i32
    %c0_i32_0 = arith.constant 0 : i32
    %c0_i32_1 = arith.constant 0 : i32
    return %c0_i32, %c0_i32_0 : i32, i32
  }
  func.func @transform_3(%arg0: i32, %arg1: i32) -> (i32, i32, i32) {
    %c0_i32 = arith.constant 0 : i32
    %c0_i32_0 = arith.constant 0 : i32
    return %arg0, %c0_i32, %arg1 : i32, i32, i32
  }
}

</mosaic_0001>

<bundles_post_ra>
// kernel: tpu_custom_call.1
= control target key start
LH: loop header
LB: loop body
LE: loop exit
PB: predicated region body
PF: predicated region fallthrough
CT: control target
= control target key end

     0   :  { %8 = vsyncpa [#allocation3], 0  ;;  %s1272_s0 = inlined_call_operand.hbm [shape: f32[2,96,256], index: 0, kind: input, shape index: {}]   ;;  %s1273_s1 = inlined_call_operand.hbm [shape: f32[64,96], index: 1, kind: input, shape index: {}]   ;;  %s1274_s2 = inlined_call_operand.hbm [shape: f32[64,1], index: 2, kind: input, shape index: {}]   ;;  %s1275_s3 = inlined_call_operand.hbm [shape: f32[2,64,256], index: 3, kind: output, shape index: {}]  }
   0x1   :  { %10 = vsyncpa [#allocation3 + $0x1], 0 }
   0x2   :  { %11 = vsyncpa [#allocation6], 0 }
   0x3   :  { %12 = vsyncpa [#allocation4], 0 }
   0x4   :  { %14 = vsyncpa [#allocation4 + $0x1], 0  ;;  %s957_s12 = smov 0   ;;  %s959_s13 = smov 0  }
   0x5   :  { %s961_s14 = smov 0   ;;  %s963_s15 = smov 0  }
   0x6   :  { %s965_s16 = smov 0   ;;  %s967_s17 = smov 0  }
   0x7 LB: > { %s594_s18 = sadd.s32 4294967295, %s923_s17   ;;  %s595_s19 = sadd.s32 4294967294, %s923_s17   ;;  %s923_s17 = sphi %s967_s17, %s20_s17   ;;  %s919_s16 = sphi %s965_s16, %s1297_s16   ;;  %s915_s15 = sphi %s963_s15, %s1296_s15   ;;  %s911_s14 = sphi %s961_s14, %s1295_s14   ;;  %s907_s13 = sphi %s959_s13, %s1294_s13   ;;  %s903_s12 = sphi %s957_s12, %s1293_s12  }
   0x8   : > { %p54_p0 = scmp.ne.s32.totalorder %s907_s13, %s903_s12  ;;  %p991_p1 = scmp.eq.s32.totalorder %s594_s18, 0 }
   0x9   : > { %p995_p2 = scmp.eq.s32.totalorder %s594_s18, 1  ;;  %p128_p3 = scmp.eq.s32.totalorder %s595_s19, 1 }
   0xa   : > { %s1280_s20 = scalar_select %p991_p1, 1, 0 }
   0xb   : > { %p1001_p4 = por %p991_p1, %p54_p0  ;;  %p596_p5 = scmp.ge.s32.totalorder %s923_s17, 1 }
   0xc   : > { %p1006_p6 = por %p128_p3, %p54_p0  ;;  %p135_p7 = scmp.lt.s32.totalorder %s923_s17, 3 }
   0xd   : > { %s1282_s22 = scalar_select %p1001_p4, 1, 0 }
   0xe   : > { %s1283_s23 = scalar_select %p1006_p6, 1, 0 }
   0xf   : > { %p1011_p8 = pnand %p596_p5, %p135_p7  ;;  %s925_s25 = smov [#allocation5]  }
  0x10   : > { %s147_s26 = sshll.u32 %s925_s25, 4  ;;  %s926_s28 = smov [#allocation7]   ;;  %s1015_s26 = int_to_ptr.vmem [resolvable:$true] %s147_s26 }
  0x11   : > { %p670_p9 = pneg %p1011_p8  ;;  %s160_s29 = sshll.u32 %s926_s28, 4  ;;  %s1026_s29 = int_to_ptr.vmem [resolvable:$true] %s160_s29 }
  0x12   : > { %s751_s5 = scalar_lea.hbm %s1273_s1, 1024 }
  0x13   : > { %p1022_p11 = pnand %p670_p9, %p991_p1  ;;  %p752_p12 = scmp.ne.s32.totalorder %s1273_s1, %s751_s5 }
  0x14   : > { %p758_p5 = scmp.lt.u32.totalorder %s751_s5, %s1273_s1 }
  0x15   : > { %p753_p13 = pneg %p1022_p11 }
  0x17   : > { %p754_p0 = pnand %p753_p13, %p752_p12 }
  0x19   : > { %p755_p3 = pneg %p754_p0 }
  0x1b   : > { %p760_p7 = pnand %p758_p5, %p755_p3 }
  0x1d   : > { %763 = shalt.err (!%p760_p7)
}
  0x1e   : > { %s764_s10 = scalar_lea.vmem %s1015_s26, 1024  ;;  %p772_p1 = scmp.lt.s32.totalorder %s1015_s26, %s1015_s26 }
  0x1f   : > { %p765_p9 = scmp.ne.s32.totalorder %s1015_s26, %s764_s10  ;;  %p773_p12 = scmp.lt.s32.totalorder %s764_s10, %s764_s10 }
  0x21   : > { %p767_p10 = pnand %p765_p9, %p753_p13  ;;  %p774_p0 = por %p773_p12, %p772_p1 }
  0x23   : > { %p768_p6 = pneg %p767_p10 }
  0x25   : > { %p775_p4 = pnand %p774_p0, %p768_p6 }
  0x27   : > { %778 = shalt.err (!%p775_p4)
}
  0x28   : > { %s927_s11 = smov 128   ;;  %s928_s18 = smov 8  }
  0x29   : > { %673 = dma.hbm_to_vmem [thread:$0]  (!%p1022_p11), %s1273_s1, 1024, %s1015_s26, [#allocation6], %s927_s11, %s927_s11, %s928_s18  }
  0x2a   : > { %s779_s4 = scalar_lea.hbm %s1274_s2, 1024 }
  0x2b   : > { %p780_p1 = scmp.ne.s32.totalorder %s1274_s2, %s779_s4  ;;  %p786_p10 = scmp.lt.u32.totalorder %s779_s4, %s1274_s2 }
  0x2d   : > { %p782_p4 = pnand %p780_p1, %p753_p13 }
  0x2f   : > { %p783_p6 = pneg %p782_p4 }
  0x31   : > { %p788_p3 = pnand %p786_p10, %p783_p6 }
  0x33   : > { %791 = shalt.err (!%p788_p3)
}
  0x34   : > { %s792_s26 = scalar_lea.vmem %s1026_s29, 1024  ;;  %p800_p12 = scmp.lt.s32.totalorder %s1026_s29, %s1026_s29 }
  0x35   : > { %p793_p5 = scmp.ne.s32.totalorder %s1026_s29, %s792_s26  ;;  %p801_p0 = scmp.lt.s32.totalorder %s792_s26, %s792_s26 }
  0x37   : > { %p795_p7 = pnand %p793_p5, %p753_p13  ;;  %p802_p1 = por %p801_p0, %p800_p12 }
  0x39   : > { %p796_p9 = pneg %p795_p7 }
  0x3b   : > { %p803_p4 = pnand %p802_p1, %p796_p9 }
  0x3d   : > { %806 = shalt.err (!%p803_p4)
}
  0x3e   : > { %676 = dma.hbm_to_vmem [thread:$0]  (!%p1022_p11), %s1274_s2, 1024, %s1026_s29, [#allocation6], %s927_s11, %s927_s11, %s928_s18  }
  0x3f   : > { %s32_s19 = sadd.s32 1, %s919_s16  ;;  %s41_s25 = sadd.s32 1, %s911_s14 }
  0x40   : > { %p34_p13 = scmp.ge.s32.totalorder %s32_s19, 2  ;;  %p48_p6 = scmp.ne.s32.totalorder %s911_s14, %s907_s13 }
  0x41   : > { %p49_p10 = scmp.eq.s32.totalorder %s923_s17, 0  ;;  %p687_p3 = scmp.lt.s32.totalorder %s923_s17, 2 }
  0x42   : > { %s1299_s19 = smov (%p34_p13, %s32_s19), 0  ;;  %p1090_p7 = por %p995_p2, %p48_p6 }
  0x43   : > { %p50_p5 = por %p49_p10, %p48_p6  ;;  %s36_s28 = ssub.s32 %s919_s16, %s1299_s19 }
  0x44   : > { %s1286_s27 = scalar_select %p1090_p7, 1, 0 }
  0x45   : > { %s174_s30 = sand.u32 1, %s911_s14   ;;  %p39_p9 = scmp.eq.s32.totalorder %s36_s28, 0 }
  0x46   : > { %s655_s29 = smul.u32 192, %s174_s30  ;;  %p1097_p11 = pnand %p687_p3, %p50_p5 }
  0x47   : > { %s1102_s18 = scalar_select %p39_p9, %s911_s14, %s41_s25  }
  0x48   : > { %s656_s4 = smul.u32 3072, %s919_s16  ;;  %s178_s5 = scalar_lea.vmem [#allocation2], %s655_s29 }
  0x49   : > { %s187_s6 = sshll.u32 %s178_s5, 4  ;;  %s1112_s26 = scalar_lea.sflag [#allocation3], %s174_s30  ;;  %s1110_s6 = int_to_ptr.vmem [resolvable:$true] %s187_s6 }
  0x4a   : > { %s1108_s8 = scalar_lea.hbm %s1272_s0, %s656_s4  ;;  %p809_p12 = pneg %p1097_p11 }
  0x4b   : > { %s807_s9 = scalar_lea.hbm %s1108_s8, 3072  ;;  %s812_s28 = scalar_lea.hbm %s1272_s0, 6144 }
  0x4c   : > { %p808_p2 = scmp.ne.s32.totalorder %s1108_s8, %s807_s9  ;;  %p813_p4 = scmp.lt.u32.totalorder %s1108_s8, %s1272_s0 }
  0x4d   : > { %p814_p13 = scmp.lt.u32.totalorder %s812_s28, %s807_s9  ;;  %p816_p10 = scmp.lt.u32.totalorder %s807_s9, %s1108_s8 }
  0x4e   : > { %p810_p0 = pnand %p809_p12, %p808_p2 }
  0x4f   : > { %p815_p6 = por %p814_p13, %p813_p4 }
  0x50   : > { %p811_p1 = pneg %p810_p0 }
  0x51   : > { %p817_p3 = por %p816_p10, %p815_p6 }
  0x53   : > { %p818_p5 = pnand %p817_p3, %p811_p1 }
  0x55   : > { %821 = shalt.err (!%p818_p5)
}
  0x56   : > { %s822_s30 = scalar_lea.vmem %s1110_s6, 3072  ;;  %s929_s5 = smov [#allocation2]  }
  0x57   : > { %p823_p9 = scmp.ne.s32.totalorder %s1110_s6, %s822_s30  ;;  %s827_s21 = sshll.u32 %s929_s5, 4  ;;  %s828_s21 = int_to_ptr.vmem [resolvable:$false] %s827_s21 }
  0x58   : > { %s829_s7 = scalar_lea.vmem %s828_s21, 6144  ;;  %p830_p7 = scmp.lt.s32.totalorder %s1110_s6, %s828_s21 }
  0x59   : > { %p825_p2 = pnand %p823_p9, %p809_p12  ;;  %p831_p4 = scmp.lt.s32.totalorder %s829_s7, %s822_s30 }
  0x5b   : > { %p826_p0 = pneg %p825_p2  ;;  %p832_p13 = por %p831_p4, %p830_p7 }
  0x5d   : > { %p833_p6 = pnand %p832_p13, %p826_p0 }
  0x5f   : > { %836 = shalt.err (!%p833_p6)
}
  0x60   : > { %s930_s9 = smov 256   ;;  %s931_s10 = smov 16  }
  0x61   : > { %680 = dma.hbm_to_vmem [thread:$0]  (!%p1097_p11), %s1108_s8, 3072, %s1110_s6, %s1112_s26, %s930_s9, %s930_s9, %s931_s10  }
  0x62   : > { %199 = sbr.rel (%p1011_p8) target bundleno = 378 (0x17a), region = 32  ;;  %s1143_s25 = sand.u32 (!%p1011_p8), 1, %s907_s13  }
  0x63   : > { %s657_s28 = smul.u32 (!%p1011_p8), 192, %s1143_s25  ;;  %s202_s29 = scalar_lea.sflag (!%p1011_p8), [#allocation3], %s1143_s25 }
  0x64   : > { %p1288_p7 = scmp.ne.s32.totalorder (!%p1011_p8), %s1282_s22, 0 }
  0x65   : > { %s1147_s4 = scalar_lea.vmem (!%p1011_p8), [#allocation2], %s657_s28 }
  0x69   : > { %890 = dma.done.wait (%p1288_p7), %s202_s29, 3072  }
  0x6a   : > { %892 = vsyncadd (%p1288_p7), %s202_s29, 4294964224  ;;  %p1289_p11 = scmp.ne.s32.totalorder %s1280_s20, 0 }
  0x6c   : > { %894 = dma.done.wait (%p1289_p11), [#allocation6], 2048  }
  0x6d   : > { %896 = vsyncadd (%p1289_p11), [#allocation6], 4294965248  ;;  %v932_v0 = vmov 0.0   ;;  %v933_v1 = vmov 0   ;;  %v247_v2 = vld [vmem:[%s1147_s4 + $0x8] sm:$0xff]  ;;  %v249_v3 = vld [vmem:[%s1147_s4 + $0x18] sm:$0xff] }
  0x6e   : > { %407 = vmatprep.mubr.f32.mxu0 %v932_v0  ;;  %431 = vmatprep.mubr.f32.mxu1 %v932_v0  ;;  %v246_v4 = vld [vmem:[%s1147_s4] sm:$0xff]  ;;  %v619_v5 = vpack.c.bf16 %v249_v3, %v247_v2  ;;  %v248_v6 = vld [vmem:[%s1147_s4 + $0x10] sm:$0xff]  ;;  %v251_v7 = vld [vmem:[%s1147_s4 + $0x28] sm:$0xff]  ;;  %vm318_vm0 = vcmask 785408   ;;  %s604_s20 = sshll.u32 %s1143_s25, 7  ;;  %s618_s24 = sshll.u32 %s915_s15, 11 }
  0x6f   : > { %750 = vset.pattern.permute.xlu1 %v933_v1  ;;  %749 = vset.pattern.permute.xlu0 %v933_v1  ;;  %v253_v8 = vld [vmem:[%s1147_s4 + $0x38] sm:$0xff]  ;;  %v621_v9 = vpack.c.bf16 %v248_v6, %v246_v4  ;;  %v250_v11 = vld [vmem:[%s1147_s4 + $0x20] sm:$0xff]  ;;  %v252_v12 = vld [vmem:[%s1147_s4 + $0x30] sm:$0xff]  ;;  %s1198_s22 = scalar_lea.vmem [#allocation8], %s604_s20  ;;  %s1217_s8 = scalar_lea.hbm %s1275_s3, %s618_s24 }
  0x70   : > { %v623_v10 = vpack.c.bf16 %v253_v8, %v251_v7  ;;  %v255_v13 = vld [vmem:[%s1147_s4 + $0x48] sm:$0xff]  ;;  %620 = vmatprep.subr.bf16.mxu0 %v619_v5  ;;  %643 = vmatprep.subr.bf16.mxu1 %v619_v5  ;;  %v257_v14 = vld [vmem:[%s1147_s4 + $0x58] sm:$0xff]  ;;  %v625_v15 = vpack.c.bf16 %v252_v12, %v250_v11  ;;  %v254_v17 = vld [vmem:[%s1147_s4 + $0x40] sm:$0xff]  ;;  %s488_s11 = sshll.u32 %s1198_s22, 4  ;;  %s473_s26 = scalar_lea.sflag [#allocation4], %s1143_s25  ;;  %s1219_s11 = int_to_ptr.vmem [resolvable:$true] %s488_s11 }
  0x71   : > { %622 = vmatpush1.bf16.msra.mxu0 %v621_v9  ;;  %649 = vmatpush1.bf16.msra.mxu1 %v621_v9  ;;  %v627_v16 = vpack.c.bf16 %v257_v14, %v255_v13  ;;  %v256_v18 = vld [vmem:[%s1147_s4 + $0x50] sm:$0xff]  ;;  %v259_v19 = vld [vmem:[%s1147_s4 + $0x68] sm:$0xff]  ;;  %v261_v20 = vld [vmem:[%s1147_s4 + $0x78] sm:$0xff]  ;;  %s837_s30 = scalar_lea.vmem %s1219_s11, 2048  ;;  %p1290_p12 = scmp.ne.s32.totalorder %s1286_s27, 0 }
  0x72   : > { %624 = vmatprep.subr.bf16.mxu0 %v623_v10  ;;  %644 = vmatprep.subr.bf16.mxu1 %v623_v10  ;;  %v629_v21 = vpack.c.bf16 %v256_v18, %v254_v17  ;;  %v631_v22 = vpack.c.bf16 %v261_v20, %v259_v19  ;;  %v258_v23 = vld [vmem:[%s1147_s4 + $0x60] sm:$0xff]  ;;  %v260_v24 = vld [vmem:[%s1147_s4 + $0x70] sm:$0xff]  ;;  %v263_v25 = vld [vmem:[%s1147_s4 + $0x88] sm:$0xff]  ;;  %p838_p8 = scmp.ne.s32.totalorder %s1219_s11, %s837_s30  ;;  %s934_s5 = smov [#allocation8]  }
  0x73   : > { %v265_v26 = vld [vmem:[%s1147_s4 + $0x98] sm:$0xff]  ;;  %v272_v27 = vld [vmem:[#allocation7 + $0x10] sm:$0xff]  ;;  %v270_v28 = vld [vmem:[#allocation7] sm:$0xff]  ;;  %v633_v29 = vpack.c.bf16 %v260_v24, %v258_v23  ;;  %s841_s21 = sshll.u32 %s934_s5, 4  ;;  %s842_s21 = int_to_ptr.vmem [resolvable:$false] %s841_s21 }
  0x74   : > { %290 = vperm.xlu1 %750, %v272_v27   ;;  %v273_v30 = vld [vmem:[#allocation7 + $0x18] sm:$0xff]  ;;  %v635_v31 = vpack.c.bf16 %v265_v26, %v263_v25  ;;  %v262_v32 = vld [vmem:[%s1147_s4 + $0x80] sm:$0xff]  ;;  %v264_v33 = vld [vmem:[%s1147_s4 + $0x90] sm:$0xff]  ;;  %280 = vperm.xlu0 %749, %v270_v28   ;;  %p839_p1 = pnand %p838_p8, %p1290_p12  ;;  %s843_s7 = scalar_lea.vmem %s842_s21, 4096 }
  0x75   : > { %626 = vmatpush1.bf16.msra.mxu0 %v625_v15  ;;  %650 = vmatpush1.bf16.msra.mxu1 %v625_v15  ;;  %v267_v34 = vld [vmem:[%s1147_s4 + $0xa8] sm:$0xff]  ;;  %v269_v35 = vld [vmem:[%s1147_s4 + $0xb8] sm:$0xff]  ;;  %v637_v37 = vpack.c.bf16 %v264_v33, %v262_v32  ;;  %v266_v40 = vld [vmem:[%s1147_s4 + $0xa0] sm:$0xff]  ;;  %p844_p3 = scmp.lt.s32.totalorder %s1219_s11, %s842_s21  ;;  %p845_p5 = scmp.lt.s32.totalorder %s843_s7, %s837_s30 }
  0x76   : > { %628 = vmatprep.subr.bf16.mxu0 %v627_v16  ;;  %645 = vmatprep.subr.bf16.mxu1 %v627_v16  ;;  %v271_v36 = vld [vmem:[#allocation7 + $0x8] sm:$0xff]  ;;  %v639_v39 = vpack.c.bf16 %v269_v35, %v267_v34  ;;  %v268_v41 = vld [vmem:[%s1147_s4 + $0xb0] sm:$0xff]  ;;  %v274_v42 = vld [vmem:[#allocation7 + $0x20] sm:$0xff]  ;;  %p840_p10 = pneg %p839_p1 }
  0x77   : > { %v275_v38 = vld [vmem:[#allocation7 + $0x28] sm:$0xff]  ;;  %v641_v43 = vpack.c.bf16 %v268_v41, %v266_v40  ;;  %v277_v44 = vld [vmem:[#allocation7 + $0x38] sm:$0xff]  ;;  %v276_v45 = vld [vmem:[#allocation7 + $0x30] sm:$0xff]  ;;  %p846_p9 = por %p845_p5, %p844_p3 }
  0x78   : > { %295 = vperm.xlu1 %750, %v273_v30   ;;  %285 = vperm.xlu0 %749, %v271_v36   ;;  %v238_v46 = vld [vmem:[#allocation5] sm:$0xff]  ;;  %v239_v48 = vld [vmem:[#allocation5 + $0x8] sm:$0xff]  ;;  %v240_v50 = vld [vmem:[#allocation5 + $0x10] sm:$0xff] }
  0x79   : > { %630 = vmatpush1.bf16.msra.mxu0 %v629_v21  ;;  %651 = vmatpush1.bf16.msra.mxu1 %v629_v21  ;;  %v242_v47 = vld [vmem:[#allocation5 + $0x20] sm:$0xff]  ;;  %v243_v49 = vld [vmem:[#allocation5 + $0x28] sm:$0xff]  ;;  %v244_v51 = vld [vmem:[#allocation5 + $0x30] sm:$0xff]  ;;  %p847_p2 = pnand %p846_p9, %p840_p10 }
  0x7a   : > { %632 = vmatprep.subr.bf16.mxu0 %v631_v22  ;;  %646 = vmatprep.subr.bf16.mxu1 %v631_v22  ;;  %v241_v52 = vld [vmem:[#allocation5 + $0x18] sm:$0xff] }
  0x7b   : > { %v245_v53 = vld [vmem:[#allocation5 + $0x38] sm:$0xff] }
  0x7c   : > { %305 = vperm.xlu1 %750, %v275_v38   ;;  %300 = vperm.xlu0 %749, %v274_v42  }
  0x7d   : > { %634 = vmatpush1.bf16.msra.mxu0 %v633_v29  ;;  %652 = vmatpush1.bf16.msra.mxu1 %v633_v29 }
  0x7e   : > { %636 = vmatprep.subr.bf16.mxu0 %v635_v31  ;;  %647 = vmatprep.subr.bf16.mxu1 %v635_v31 }
  0x80   : > { %315 = vperm.xlu1 %750, %v277_v44   ;;  %310 = vperm.xlu0 %749, %v276_v45  }
  0x81   : > { %638 = vmatpush1.bf16.msra.mxu0 %v637_v37  ;;  %653 = vmatpush1.bf16.msra.mxu1 %v637_v37 }
  0x82   : > { %640 = vmatprep.subr.bf16.mxu0 %v639_v39  ;;  %648 = vmatprep.subr.bf16.mxu1 %v639_v39 }
  0x85   : > { %642 = vmatpush1.bf16.msra.mxu0 %v641_v43  ;;  %654 = vmatpush1.bf16.msra.mxu1 %v641_v43 }
  0x88   : > { %605 = vmatmul.mubr.msk.f32.vlgmr.msra.gmra.mrb[0].mxu0 %vm318_vm0, %v238_v46  ;;  %609 = vmatmul.mubr.msk.f32.vlgmr.msra.gmra.mrb[0].mxu1 %vm318_vm0, %v242_v47 }
  0x89   : > { %413 = vmatprep.mubr.f32.mxu0 %v932_v0  ;;  %437 = vmatprep.mubr.f32.mxu1 %v932_v0 }
  0x8c   : > { %606 = vmatmul.mubr.msk.f32.gmra.mrb[2].mxu0 %vm318_vm0, %v239_v48  ;;  %610 = vmatmul.mubr.msk.f32.gmra.mrb[2].mxu1 %vm318_vm0, %v243_v49 }
  0x8d   : > { %419 = vmatprep.mubr.f32.mxu0 %v932_v0  ;;  %443 = vmatprep.mubr.f32.mxu1 %v932_v0 }
  0x90   : > { %607 = vmatmul.mubr.msk.f32.gmra.mrb[4].mxu0 %vm318_vm0, %v240_v50  ;;  %611 = vmatmul.mubr.msk.f32.gmra.mrb[4].mxu1 %vm318_vm0, %v244_v51 }
  0x91   : > { %425 = vmatprep.mubr.f32.mxu0 %v932_v0  ;;  %449 = vmatprep.mubr.f32.mxu1 %v932_v0 }
  0x94   : > { %608 = vmatmul.mubr.msk.f32.gmra.mrb[6].mxu0 %vm318_vm0, %v241_v52  ;;  %612 = vmatmul.mubr.msk.f32.gmra.mrb[6].mxu1 %vm318_vm0, %v245_v53 }
  0xf3   : > { %v281_v54 = vpop.permute.xlu0 %280  ;;  %v291_v55 = vpop.permute.xlu1 %290 }
  0xf7   : > { %v286_v56 = vpop.permute.xlu0 %285  ;;  %v296_v57 = vpop.permute.xlu1 %295 }
  0xfb   : > { %v301_v58 = vpop.permute.xlu0 %300  ;;  %v306_v3 = vpop.permute.xlu1 %305 }
  0xff   : > { %v311_v12 = vpop.permute.xlu0 %310  ;;  %v316_v21 = vpop.permute.xlu1 %315 }
 0x15b   : > { %v409_v59 = vpop.f32.mrb[0].mxu0  ;;  %v433_v60 = vpop.f32.mrb[0].mxu1 }
 0x15c   : > { %v410_v61 = vadd.f32 %v409_v59, %v281_v54  ;;  %v434_v62 = vadd.f32 %v433_v60, %v301_v58  ;;  %v411_v63 = vpop.f32.mrb[1].mxu0  ;;  %v435_v1 = vpop.f32.mrb[1].mxu1 }
 0x15d   : > { %v412_v2 = vadd.f32 %v411_v63, %v281_v54  ;;  %v436_v0 = vadd.f32 %v435_v1, %v301_v58 }
 0x15e   : > { %456 = vst [vmem:[%s1198_s22] sm:$0xff] %v410_v61  ;;  %464 = vst [vmem:[%s1198_s22 + $0x40] sm:$0xff] %v434_v62 }
 0x15f   : > { %457 = vst [vmem:[%s1198_s22 + $0x8] sm:$0xff] %v412_v2  ;;  %465 = vst [vmem:[%s1198_s22 + $0x48] sm:$0xff] %v436_v0  ;;  %v415_v4 = vpop.f32.mrb[2].mxu0  ;;  %v439_v5 = vpop.f32.mrb[2].mxu1 }
 0x160   : > { %v416_v6 = vadd.f32 %v415_v4, %v286_v56  ;;  %v440_v7 = vadd.f32 %v439_v5, %v306_v3  ;;  %v417_v8 = vpop.f32.mrb[3].mxu0  ;;  %v441_v9 = vpop.f32.mrb[3].mxu1 }
 0x161   : > { %v418_v10 = vadd.f32 %v417_v8, %v286_v56  ;;  %v442_v11 = vadd.f32 %v441_v9, %v306_v3 }
 0x162   : > { %458 = vst [vmem:[%s1198_s22 + $0x10] sm:$0xff] %v416_v6  ;;  %466 = vst [vmem:[%s1198_s22 + $0x50] sm:$0xff] %v440_v7 }
 0x163   : > { %459 = vst [vmem:[%s1198_s22 + $0x18] sm:$0xff] %v418_v10  ;;  %467 = vst [vmem:[%s1198_s22 + $0x58] sm:$0xff] %v442_v11  ;;  %v421_v13 = vpop.f32.mrb[4].mxu0  ;;  %v445_v14 = vpop.f32.mrb[4].mxu1 }
 0x164   : > { %v422_v15 = vadd.f32 %v421_v13, %v291_v55  ;;  %v446_v16 = vadd.f32 %v445_v14, %v311_v12  ;;  %v423_v17 = vpop.f32.mrb[5].mxu0  ;;  %v447_v18 = vpop.f32.mrb[5].mxu1 }
 0x165   : > { %v424_v19 = vadd.f32 %v423_v17, %v291_v55  ;;  %v448_v20 = vadd.f32 %v447_v18, %v311_v12 }
 0x166   : > { %460 = vst [vmem:[%s1198_s22 + $0x20] sm:$0xff] %v422_v15  ;;  %468 = vst [vmem:[%s1198_s22 + $0x60] sm:$0xff] %v446_v16 }
 0x167   : > { %461 = vst [vmem:[%s1198_s22 + $0x28] sm:$0xff] %v424_v19  ;;  %469 = vst [vmem:[%s1198_s22 + $0x68] sm:$0xff] %v448_v20  ;;  %v427_v22 = vpop.f32.mrb[6].mxu0  ;;  %v451_v23 = vpop.f32.mrb[6].mxu1 }
 0x168   : > { %v428_v24 = vadd.f32 %v427_v22, %v296_v57  ;;  %v452_v25 = vadd.f32 %v451_v23, %v316_v21  ;;  %v429_v26 = vpop.f32.mrb[7].mxu0  ;;  %v453_v27 = vpop.f32.mrb[7].mxu1 }
 0x169   : > { %v430_v28 = vadd.f32 %v429_v26, %v296_v57  ;;  %v454_v29 = vadd.f32 %v453_v27, %v316_v21 }
 0x16a   : > { %462 = vst [vmem:[%s1198_s22 + $0x30] sm:$0xff] %v428_v24  ;;  %470 = vst [vmem:[%s1198_s22 + $0x70] sm:$0xff] %v452_v25 }
 0x16b   : > { %463 = vst [vmem:[%s1198_s22 + $0x38] sm:$0xff] %v430_v28  ;;  %471 = vst [vmem:[%s1198_s22 + $0x78] sm:$0xff] %v454_v29 }
 0x16c   : > { %850 = shalt.err (!%p847_p2)
}
 0x16d   : > { %s851_s9 = scalar_lea.hbm %s1217_s8, 2048  ;;  %s855_s29 = scalar_lea.hbm %s1275_s3, 4096 }
 0x16e   : > { %p852_p0 = scmp.ne.s32.totalorder %s1217_s8, %s851_s9  ;;  %p856_p6 = scmp.lt.u32.totalorder %s1217_s8, %s1275_s3 }
 0x16f   : > { %p857_p7 = scmp.lt.u32.totalorder %s855_s29, %s851_s9  ;;  %p859_p8 = scmp.lt.u32.totalorder %s851_s9, %s1217_s8 }
 0x170   : > { %p853_p4 = pnand %p852_p0, %p1290_p12 }
 0x171   : > { %p858_p11 = por %p857_p7, %p856_p6 }
 0x172   : > { %p854_p13 = pneg %p853_p4 }
 0x173   : > { %p860_p1 = por %p859_p8, %p858_p11 }
 0x175   : > { %p861_p10 = pnand %p860_p1, %p854_p13 }
 0x177   : > { %864 = shalt.err (!%p861_p10)
}
 0x178   : > { %s935_s22 = smov 256   ;;  %s936_s24 = smov 16  }
 0x179   : > { %668 = dma.vmem_to_hbm [thread:$0]  (%p1290_p12), %s1219_s11, 2048, %s1217_s8, %s473_s26, %s935_s22, %s935_s22, %s936_s24  }
 0x17a PF: > { %s503_s6 = sand.u32 1, %s903_s12   ;;  %p1291_p3 = scmp.ne.s32.totalorder %s1283_s23, 0 }
 0x17b   : > { %p1292_p5 = scmp.ge.s32.totalorder %s923_s17, 2  ;;  %s504_s15 = scalar_lea.sflag [#allocation4], %s503_s6 }
 0x17d   : > { %p682_p9 = pnand %p1292_p5, %p1291_p3 }
 0x17f   : > { %898 = dma.done.wait (!%p682_p9), %s504_s15, 2048  }
 0x180   : > { %900 = vsyncadd (!%p682_p9), %s504_s15, 4294965248  ;;  %s20_s17 = sadd.s32 1, %s923_s17   ;;  %s1293_s12 = smov %s907_s13 }
 0x181   : > { %p17_p2 = scmp.ge.s32.totalorder %s20_s17, 4   ;;  %s1294_s13 = smov %s911_s14 }
 0x182   : > { %s1295_s14 = smov %s1102_s18  ;;  %s1296_s15 = smov %s919_s16 }
 0x183   : > { %s1297_s16 = smov %s1299_s19  ;;  %19 = sbr.rel (!%p17_p2) target bundleno = 7 (0x7), region = 85 }
 0x18a   :  { %509 = vsyncpa [#allocation3], 1 }
 0x18b   :  { %511 = vsyncpa [#allocation3 + $0x1], 1 }
 0x18c   :  { %512 = vsyncpa [#allocation6], 1 }
 0x18d   :  { %513 = vsyncpa [#allocation4], 1 }
 0x18e   :  { %515 = vsyncpa [#allocation4 + $0x1], 1 }

</bundles_post_ra>
